<compile_context>
chip_gen: v7x
topology: tpu7x:2x2x1
jax: 0.10.0
libtpu: 0.0.40
codegen_flags: <defaults>
</compile_context>

<pallas_src>
import functools

import jax
import jax.numpy as jnp
from jax import lax
from jax.experimental import pallas as pl
from jax.experimental.pallas import tpu as pltpu

ALPHA = 1.0
GAMMA = 2.0


def _focal_loss_kernel(x_ref, t_ref, o_ref, *, n_valid, tile_n, tiles_per_part):
    """One (tile_n, C) batch tile -> accumulate a partial focal-loss sum into o_ref.

    x_ref: (tile_n, C) logits in native dtype (f32/bf16), upcast in-register.
    t_ref: (tile_n, 1) int32 targets (lane dim pads to 128 in VMEM; accounted for in
           the tile-size budget).
    o_ref: (1, 1, 1) f32 per-partition partial sum (resident across the i axis).

    Out-of-range rows (ragged last block, or a clamped duplicate block when the grid
    overshoots the tile count) may contain garbage/NaN logits; every such row is
    zeroed by the `row < n_valid` select before the reduction, and row-wise math only
    reduces along the class axis, so valid rows are never contaminated.
    """
    p = pl.program_id(0)   # partition ("parallel" axis -> megacore on v7x)
    i = pl.program_id(1)   # batch tile within partition ("arbitrary" axis)

    @pl.when(i == 0)
    def _():
        o_ref[...] = jnp.zeros_like(o_ref)

    x = x_ref[...].astype(jnp.float32)        # stream native dtype, free VPU upcast
    t = t_ref[...]                            # (tile_n, 1) int32
    tn, c = x.shape

    # Numerically-stable log-sum-exp over the class axis.
    m = jnp.max(x, axis=-1, keepdims=True)                               # (tn, 1)
    lse = m + jnp.log(jnp.sum(jnp.exp(x - m), axis=-1, keepdims=True))   # (tn, 1)

    # Gather the target logit via one-hot compare + lane reduce.
    col = lax.broadcasted_iota(jnp.int32, (tn, c), 1)                    # (tn, C)
    tgt_logit = jnp.sum(jnp.where(col == t, x, 0.0), axis=-1, keepdims=True)

    ce = lse - tgt_logit                      # (tn, 1) per-sample CE
    pt = jnp.exp(-ce)
    one_minus_pt = 1.0 - pt                   # matches PyTorch (1 - exp(-ce)) exactly
    if GAMMA == 2.0:
        mod = one_minus_pt * one_minus_pt     # gamma == 2 -> explicit VPU multiply
    else:
        mod = jnp.power(one_minus_pt, jnp.float32(GAMMA))
    focal = (ALPHA * mod) * ce

    # Mask rows past the true batch size (ragged last block / clamped extra blocks).
    # NOTE: tile_idx here is the UNCLAMPED logical tile index, so duplicated clamped
    # blocks land entirely past n_valid and contribute exactly zero.
    tile_idx = p * tiles_per_part + i
    row = tile_idx * tile_n + lax.broadcasted_iota(jnp.int32, (tn, 1), 0)
    focal = jnp.where(row < n_valid, focal, 0.0)

    o_ref[...] += jnp.sum(focal, axis=0, keepdims=True).reshape(1, 1, 1)


def _pick_tile_n(n, c, itemsize, vmem_cap, align):
    """Biggest batch tile such that one pipelined buffer set (logits block + padded
    targets block) stays within a generation-aware budget; double-buffering doubles it."""
    c_pad = -(-c // 128) * 128
    # Per-row VMEM bytes: logits row (lanes padded to 128) + (.,1) int32 target row
    # which also pads to 128 lanes (= 512 B).
    row_bytes = c_pad * itemsize + 128 * 4
    per_buffer_budget = min(8 << 20, vmem_cap // 8)   # 8 MiB on v5e/v6e/v7x
    t = per_buffer_budget // max(1, row_bytes)
    t = (t // align) * align
    t = max(align, min(4096, t))                      # small-C tiles up to 4096 rows
    t = min(t, -(-n // align) * align)                # don't pad tiny batches up
    return max(align, t)


def focal_loss(inputs, targets, *, tile_n=None):
    """inputs: (N, C) logits (f32 or bf16); targets: (N,) int labels -> scalar f32."""
    n, c = inputs.shape
    itemsize = jnp.dtype(inputs.dtype).itemsize
    align = max(8, 32 // max(1, itemsize))    # sublane packing: f32 -> 8 rows, bf16 -> 16

    try:
        vmem_cap = int(pltpu.get_tpu_info().vmem_capacity_bytes)
    except Exception:
        vmem_cap = 64 * 1024 * 1024           # conservative (v7x) fallback

    if tile_n is None:
        tile_n = _pick_tile_n(n, c, itemsize, vmem_cap, align)
    assert tile_n % align == 0, (tile_n, align)

    num_tiles = -(-n // tile_n)
    # Shard the batch across the two TensorCores on v7x; sequential (harmless) on
    # single-TC v5e/v6e.
    num_parts = 2 if num_tiles >= 2 else 1
    tiles_per_part = -(-num_tiles // num_parts)
    last_tile = num_tiles - 1

    # Targets only: tiny (N, 1) int32 view; logits are passed through UNPADDED.
    t2d = targets.astype(jnp.int32).reshape(n, 1)

    # Explicit scoped-VMEM limit: enough for 2x (logits + padded targets) buffers
    # plus headroom, never above ~75% of physical VMEM (v7x has only 64 MiB).
    c_pad = -(-c // 128) * 128
    need = 2 * tile_n * c_pad * itemsize + 2 * tile_n * 128 * 4 + (1 << 16)
    vmem_limit = int(min(vmem_cap * 3 // 4, max(need + (8 << 20), 32 << 20)))

    # Clamp block indices so a grid that overshoots the tile count (odd num_tiles on
    # the 2-partition grid) never issues an out-of-bounds block DMA; the kernel's row
    # mask (computed from the unclamped tile index) zeroes those duplicated blocks.
    def x_map(p, i):
        return (jnp.minimum(p * tiles_per_part + i, last_tile), 0)

    def t_map(p, i):
        return (jnp.minimum(p * tiles_per_part + i, last_tile), 0)

    kernel = functools.partial(
        _focal_loss_kernel, n_valid=n, tile_n=tile_n, tiles_per_part=tiles_per_part)

    partial_sums = pl.pallas_call(
        kernel,
        out_shape=jax.ShapeDtypeStruct((num_parts, 1, 1), jnp.float32),
        grid_spec=pl.GridSpec(
            grid=(num_parts, tiles_per_part),
            in_specs=[
                pl.BlockSpec((tile_n, c), x_map),
                pl.BlockSpec((tile_n, 1), t_map),
            ],
            out_specs=pl.BlockSpec((1, 1, 1), lambda p, i: (p, 0, 0)),
        ),
        compiler_params=pltpu.CompilerParams(
            dimension_semantics=("parallel", "arbitrary"),
            vmem_limit_bytes=vmem_limit,
        ),
    )(inputs, t2d)

    # Tiny final reduction + mean in XLA, divided by the TRUE batch size.
    return jnp.sum(partial_sums) / jnp.float32(n)


def focal_loss_ref(inputs, targets):
    # Pure-JAX reference for sanity checking.
    logp = jax.nn.log_softmax(inputs.astype(jnp.float32), axis=-1)
    ce = -jnp.take_along_axis(logp, targets[:, None].astype(jnp.int32), axis=-1)[:, 0]
    pt = jnp.exp(-ce)
    return jnp.mean(ALPHA * (1.0 - pt) ** GAMMA * ce)


if __name__ == "__main__":
    key = jax.random.PRNGKey(0)
    k1, k2, k3, k4 = jax.random.split(key, 4)

    # Case 1: small, single tile (matches the module's typical small-batch use).
    N, C = 8, 32
    logits = jax.random.normal(k1, (N, C), dtype=jnp.float32) * 2.0
    labels = jax.random.randint(k2, (N,), 0, C, dtype=jnp.int32)
    loss = focal_loss(logits, labels)
    jax.block_until_ready(loss)
    ref = focal_loss_ref(logits, labels)
    assert jnp.allclose(loss, ref, atol=1e-5, rtol=1e-5), (loss, ref)

    # Case 2: ragged N with NO wrapper pad — exercises both grid partitions, the
    # partial (masked) last block, and the clamped duplicate block (num_tiles=3 on a
    # 2x2 grid).
    N2, C2 = 40, 32
    logits2 = jax.random.normal(k3, (N2, C2), dtype=jnp.float32) * 2.0
    labels2 = jax.random.randint(k4, (N2,), 0, C2, dtype=jnp.int32)
    loss2 = focal_loss(logits2, labels2, tile_n=16)
    jax.block_until_ready(loss2)
    ref2 = focal_loss_ref(logits2, labels2)
    assert jnp.allclose(loss2, ref2, atol=1e-5, rtol=1e-5), (loss2, ref2)

    # Case 3: bf16 streaming path — 16-row sublane alignment, ragged last block,
    # in-register upcast.
    logits3 = logits2.astype(jnp.bfloat16)
    loss3 = focal_loss(logits3, labels2)
    jax.block_until_ready(loss3)
    ref3 = focal_loss_ref(logits3, labels2)
    assert jnp.allclose(loss3, ref3, atol=2e-3, rtol=2e-3), (loss3, ref3)

    print("KERNEL_OK")
</pallas_src>

<mosaic_0001>
module attributes {stable_mosaic.version = 11 : i64} {
  func.func @_focal_loss_kernel(%arg0: i32, %arg1: i32, %arg2: memref<8x32xf32, #tpu.memory_space<vmem>>, %arg3: memref<8x1xi32, #tpu.memory_space<vmem>>, %arg4: memref<1x1x1xf32, #tpu.memory_space<vmem>>) attributes {dimension_semantics = [#tpu.dimension_semantics<parallel>, #tpu.dimension_semantics<arbitrary>], iteration_bounds = array<i64: 1, 1>, scalar_prefetch = 0 : i64, scratch_operands = 0 : i64, tpu.core_type = #tpu.core_type<tc>, window_params = [{transform_indices = @transform_0, window_bounds = array<i64: 8, 32>}, {transform_indices = @transform_1, window_bounds = array<i64: 8, 1>}, {transform_indices = @transform_2, window_bounds = array<i64: 1, 1, 1>}]} {
    %c0_i32 = arith.constant 0 : i32
    %0 = arith.cmpi eq, %arg1, %c0_i32 : i32
    %1 = arith.extui %0 : i1 to i32
    %c0_i32_0 = arith.constant 0 : i32
    %2 = arith.cmpi ne, %1, %c0_i32_0 : i32
    scf.if %2 {
      %cst_19 = arith.constant 0.000000e+00 : f32
      %47 = vector.broadcast %cst_19 : f32 to vector<1x1x1xf32>
      %c0_20 = arith.constant 0 : index
      %c0_21 = arith.constant 0 : index
      %c0_22 = arith.constant 0 : index
      %48 = vector.load %arg4[%c0_20, %c0_21, %c0_22] : memref<1x1x1xf32, #tpu.memory_space<vmem>>, vector<1x1x1xf32>
      tpu.vector_store %arg4[%c0_20, %c0_21, %c0_22], %47 {strides = array<i32>} : memref<1x1x1xf32, #tpu.memory_space<vmem>>, vector<1x1x1xf32>,
    } else {
    }
    %c0 = arith.constant 0 : index
    %c0_1 = arith.constant 0 : index
    %3 = vector.load %arg2[%c0, %c0_1] : memref<8x32xf32, #tpu.memory_space<vmem>>, vector<8x32xf32>
    %c0_2 = arith.constant 0 : index
    %c0_3 = arith.constant 0 : index
    %4 = vector.load %arg3[%c0_2, %c0_3] : memref<8x1xi32, #tpu.memory_space<vmem>>, vector<8x1xi32>
    %cst = arith.constant dense<0xFF800000> : vector<8xf32>
    %5 = vector.multi_reduction <maximumf>, %3, %cst [1] : vector<8x32xf32> to vector<8xf32>
    %6 = vector.shape_cast %5 : vector<8xf32> to vector<8x1xf32>
    %7 = vector.broadcast %6 : vector<8x1xf32> to vector<8x32xf32>
    %8 = arith.subf %3, %7 : vector<8x32xf32>
    %9 = math.exp %8 : vector<8x32xf32>
    %cst_4 = arith.constant dense<0.000000e+00> : vector<8xf32>
    %10 = vector.multi_reduction <add>, %9, %cst_4 [1] : vector<8x32xf32> to vector<8xf32>
    %11 = vector.shape_cast %10 : vector<8xf32> to vector<8x1xf32>
    %12 = math.log %11 : vector<8x1xf32>
    %13 = arith.addf %6, %12 : vector<8x1xf32>
    %14 = tpu.iota {dimensions = array<i32: 1>} : vector<8x32xi32>
    %15 = vector.broadcast %4 : vector<8x1xi32> to vector<8x32xi32>
    %16 = arith.cmpi eq, %14, %15 : vector<8x32xi32>
    %cst_5 = arith.constant 0.000000e+00 : f32
    %17 = vector.broadcast %cst_5 : f32 to vector<8x32xf32>
    %18 = arith.select %16, %3, %17 : vector<8x32xi1>, vector<8x32xf32>
    %cst_6 = arith.constant dense<0.000000e+00> : vector<8xf32>
    %19 = vector.multi_reduction <add>, %18, %cst_6 [1] : vector<8x32xf32> to vector<8xf32>
    %20 = vector.shape_cast %19 : vector<8xf32> to vector<8x1xf32>
    %21 = arith.subf %13, %20 : vector<8x1xf32>
    %cst_7 = arith.constant 0.000000e+00 : f32
    %22 = vector.broadcast %cst_7 : f32 to vector<8x1xf32>
    %23 = arith.subf %22, %21 : vector<8x1xf32>
    %24 = math.exp %23 : vector<8x1xf32>
    %cst_8 = arith.constant 1.000000e+00 : f32
    %25 = vector.broadcast %cst_8 : f32 to vector<8x1xf32>
    %26 = arith.subf %25, %24 : vector<8x1xf32>
    %27 = arith.mulf %26, %26 : vector<8x1xf32>
    %cst_9 = arith.constant 1.000000e+00 : f32
    %28 = vector.broadcast %cst_9 : f32 to vector<8x1xf32>
    %29 = arith.mulf %28, %27 : vector<8x1xf32>
    %30 = arith.mulf %29, %21 : vector<8x1xf32>
    %c1_i32 = arith.constant 1 : i32
    %31 = arith.muli %arg0, %c1_i32 : i32
    %32 = arith.addi %31, %arg1 : i32
    %c8_i32 = arith.constant 8 : i32
    %33 = arith.muli %32, %c8_i32 : i32
    %34 = tpu.iota {dimensions = array<i32: 0>} : vector<8x1xi32>
    %35 = vector.broadcast %33 : i32 to vector<8x1xi32>
    %36 = arith.addi %35, %34 : vector<8x1xi32>
    %c8_i32_10 = arith.constant 8 : i32
    %37 = vector.broadcast %c8_i32_10 : i32 to vector<8x1xi32>
    %38 = arith.cmpi slt, %36, %37 : vector<8x1xi32>
    %cst_11 = arith.constant 0.000000e+00 : f32
    %39 = vector.broadcast %cst_11 : f32 to vector<8x1xf32>
    %40 = arith.select %38, %30, %39 : vector<8x1xi1>, vector<8x1xf32>
    %c0_12 = arith.constant 0 : index
    %c0_13 = arith.constant 0 : index
    %c0_14 = arith.constant 0 : index
    %41 = vector.load %arg4[%c0_12, %c0_13, %c0_14] : memref<1x1x1xf32, #tpu.memory_space<vmem>>, vector<1x1x1xf32>
    %cst_15 = arith.constant dense<0.000000e+00> : vector<1xf32>
    %42 = vector.multi_reduction <add>, %40, %cst_15 [0] : vector<8x1xf32> to vector<1xf32>
    %43 = vector.shape_cast %42 : vector<1xf32> to vector<1x1xf32>
    %44 = vector.shape_cast %43 : vector<1x1xf32> to vector<1x1x1xf32>
    %45 = arith.addf %41, %44 : vector<1x1x1xf32>
    %c0_16 = arith.constant 0 : index
    %c0_17 = arith.constant 0 : index
    %c0_18 = arith.constant 0 : index
    %46 = vector.load %arg4[%c0_16, %c0_17, %c0_18] : memref<1x1x1xf32, #tpu.memory_space<vmem>>, vector<1x1x1xf32>
    tpu.vector_store %arg4[%c0_16, %c0_17, %c0_18], %45 {strides = array<i32>} : memref<1x1x1xf32, #tpu.memory_space<vmem>>, vector<1x1x1xf32>,
    return
  }
  func.func @transform_0(%arg0: i32, %arg1: i32) -> (i32, i32) {
    %c1_i32 = arith.constant 1 : i32
    %0 = arith.muli %arg0, %c1_i32 : i32
    %1 = arith.addi %0, %arg1 : i32
    %c0_i32 = arith.constant 0 : i32
    %2 = arith.minsi %1, %c0_i32 : i32
    %c0_i32_0 = arith.constant 0 : i32
    %c0_i32_1 = arith.constant 0 : i32
    return %2, %c0_i32_0 : i32, i32
  }
  func.func @transform_1(%arg0: i32, %arg1: i32) -> (i32, i32) {
    %c1_i32 = arith.constant 1 : i32
    %0 = arith.muli %arg0, %c1_i32 : i32
    %1 = arith.addi %0, %arg1 : i32
    %c0_i32 = arith.constant 0 : i32
    %2 = arith.minsi %1, %c0_i32 : i32
    %c0_i32_0 = arith.constant 0 : i32
    %c0_i32_1 = arith.constant 0 : i32
    return %2, %c0_i32_0 : i32, i32
  }
  func.func @transform_2(%arg0: i32, %arg1: i32) -> (i32, i32, i32) {
    %c0_i32 = arith.constant 0 : i32
    %c0_i32_0 = arith.constant 0 : i32
    %c0_i32_1 = arith.constant 0 : i32
    return %arg0, %c0_i32, %c0_i32_0 : i32, i32, i32
  }
}

</mosaic_0001>

<bundles_post_ra>
// kernel: tpu_custom_call.1
= control target key start
LH: loop header
LB: loop body
LE: loop exit
PB: predicated region body
PF: predicated region fallthrough
CT: control target
= control target key end

     0   :  { %vm74_vm0 = vcmask 261120   ;;  %s223_s0 = inlined_call_operand.vmem [shape: f32[8,32], index: 0, kind: input, shape index: {}]   ;;  %s224_s1 = inlined_call_operand.vmem [shape: s32[8,1], index: 1, kind: input, shape index: {}]   ;;  %s225_s2 = inlined_call_operand.hbm [shape: f32[1,1,1], index: 2, kind: output, shape index: {}]  }
   0x1   :  { %v72_v0 = vld [vmem:[%s223_s0] sm:$0xff] }
   0x2   :  { %7 = vsyncpa [#allocation3], 0  ;;  %v75_v1 = vsel %vm74_vm0, %v72_v0, -inf  ;;  %v182_v2 = vmov 0   ;;  %v73_v3 = vld [vmem:[%s224_s1] sm:$0xff]  ;;  %v87_v7 = vlaneseq  ;;  %vm70_vm2 = vcmask 0  }
   0x3   :  { %151 = vset.pattern.permute.xlu0 %v182_v2  ;;  %v183_v14 = vmov 0.0   ;;  %s184_s0 = smov [#allocation2]  }
   0x4   :  { %76 = vmax.xlane.f32.xlu0 %v75_v1  ;;  %v88_v8 = vand.u32 127, %v87_v7  ;;  %71 = vst.msk [vmem:[#allocation2] sm:$0x1] %vm70_vm2, %v183_v14  ;;  %s128_s1 = sshll.u32 %s184_s0, 4  ;;  %s129_s1 = int_to_ptr.vmem [resolvable:$true] %s128_s1 }
   0x5   :  { %s158_s13 = scalar_lea.vmem %s129_s1, 16  ;;  %s162_s14 = scalar_lea.vmem %s129_s1, 32 }
   0x6   :  { %p159_p0 = scmp.ne.s32.totalorder %s129_s1, %s158_s13  ;;  %p163_p1 = scmp.lt.s32.totalorder %s129_s1, %s129_s1 }
   0x7   :  { %p164_p2 = scmp.lt.s32.totalorder %s162_s14, %s158_s13 }
   0x9   :  { %p165_p3 = por %p164_p2, %p163_p1 }
   0xb   :  { %v112_v32 = vld [vmem:[#allocation2] sm:$0x1]  ;;  %p166_p4 = pnand %p165_p3, %p159_p0 }
  0x1a   :  { %90 = vperm.xlu0 %151, %v73_v3  }
  0x91   :  { %v77_v4 = vpop.xlane.xlu0 %76 }
  0x92   :  { %v78_v5 = vsub.f32 %v72_v0, %v77_v4 }
  0x94   :  { %v79_v6 = vmul.f32 1.442695, %v78_v5 }
  0x96   :  { %152 = vpow2.f32 %v79_v6 }
  0x99   :  { %v91_v9 = vpop.permute.xlu0 %90 }
  0x9a   :  { %vm92_vm1 = vcmp.eq.s32.totalorder %v88_v8, %v91_v9 }
  0x9b   :  { %v93_v11 = vsel %vm92_vm1, %v72_v0, 0.0 }
  0x9c   :  { %v94_v13 = vsel %vm74_vm0, %v93_v11, 0.0 }
  0xa0   :  { %v153_v10 = vpop.eup %152 }
  0xa1   :  { %v81_v12 = vsel %vm74_vm0, %v153_v10, 0.0 }
  0xa2   :  { %82 = vadd.xlane.f32.xlu1 %v81_v12 }
  0xa6   :  { %95 = vadd.xlane.f32.xlu1 %v94_v13 }
 0x12f   :  { %v83_v15 = vpop.xlane.xlu1 %82 }
 0x130   :  { %154 = vlog2.f32 %v83_v15 }
 0x133   :  { %v96_v18 = vpop.xlane.xlu1 %95 }
 0x13a   :  { %v155_v16 = vpop.eup %154 }
 0x13b   :  { %v85_v17 = vmul.f32 0.6931472, %v155_v16 }
 0x13d   :  { %v86_v19 = vadd.f32 %v85_v17, %v77_v4 }
 0x13f   :  { %v97_v20 = vsub.f32 %v86_v19, %v96_v18 }
 0x141   :  { %v98_v21 = vsub.f32 0.0, %v97_v20 }
 0x143   :  { %v99_v22 = vmul.f32 1.442695, %v98_v21 }
 0x145   :  { %156 = vpow2.f32 %v99_v22 }
 0x14f   :  { %v157_v23 = vpop.eup %156 }
 0x150   :  { %v101_v24 = vsub.f32 1.0, %v157_v23 }
 0x152   :  { %v102_v25 = vmul.f32 %v101_v24, %v101_v24 }
 0x154   :  { %v103_v26 = vmul.f32 %v102_v25, %v97_v20 }
 0x156   :  { %v113_v27 = vrot.slane %v103_v26, 4 }
 0x158   :  { %v114_v28 = vadd.f32 %v113_v27, %v103_v26 }
 0x15a   :  { %v115_v29 = vrot.slane %v114_v28, 2 }
 0x15c   :  { %v116_v30 = vadd.f32 %v115_v29, %v114_v28 }
 0x15e   :  { %v117_v31 = vrot.slane %v116_v30, 1 }
 0x160   :  { %v118_v33 = vadd.f32 %v117_v31, %v116_v30 }
 0x162   :  { %v119_v34 = vadd.f32 %v118_v33, %v112_v32 }
 0x164   :  { %121 = vst.msk [vmem:[#allocation2] sm:$0x1] %vm70_vm2, %v119_v34 }
 0x165   :  { %169 = shalt.err (!%p166_p4)
}
 0x166   :  { %s170_s17 = scalar_lea.hbm %s225_s2, 16 }
 0x167   :  { %p171_p5 = scmp.ne.s32.totalorder %s225_s2, %s170_s17  ;;  %p174_p6 = scmp.lt.u32.totalorder %s170_s17, %s225_s2 }
 0x169   :  { %p176_p7 = pnand %p174_p6, %p171_p5 }
 0x16b   :  { %179 = shalt.err (!%p176_p7)
}
 0x16c   :  { %131 = dma.vmem_to_hbm [thread:$0]  %s129_s1, 16, %s225_s2, [#allocation3]  }
 0x16d   :  { %180 = dma.done.wait [#allocation3], 16  }
 0x16e   :  { %181 = vsyncadd [#allocation3], 4294967280 }
 0x16f   :  { %135 = vsyncpa [#allocation3], 1 }

</bundles_post_ra>
